<compile_context>
chip_gen: v5e
topology: v5e:2x2
jax: 0.10.0
libtpu: 0.0.40
codegen_flags: <defaults>
</compile_context>

<pallas_src>
import jax
import jax.numpy as jnp
from jax import lax
from jax.experimental import pallas as pl
from jax.experimental.pallas import tpu as pltpu

IN_F = 2            # layer_1 in_features
HID = 10            # hidden width (layer_1 / layer_2 out_features)
OUT_C = 4           # layer_3 out_features
LANE = 128

NQ = 4              # batch "quarters" packed onto sublanes
QROWS = 16          # hidden rows reserved per quarter (10 hidden + bias-feed + pad)
BIAS_ROW = HID      # hidden row pinned to 1.0 (carries layer_3 bias through the dot)

IN_ROWS = NQ * IN_F            # 8   input rows  (dense: multiple of 8)
HID_ROWS = NQ * QROWS          # 64  hidden rows
OUT_ROWS = NQ * OUT_C          # 16  output rows (dense: multiple of 8)
SLAB_ROWS = HID_ROWS + OUT_ROWS  # 80
SLAB_SHAPE = (SLAB_ROWS, LANE)

_B12_LANE = IN_ROWS            # lane 8 of the slab holds the fused bias column


def _mlp_kernel(slab_ref, x_ref, o_ref):
    # Resident parameter slab (single DMA, constant index_map).
    w12 = slab_ref[0:HID_ROWS, 0:IN_ROWS]                    # (64, 8)  block-diag fused L1∘L2
    b12 = slab_ref[0:HID_ROWS, _B12_LANE:_B12_LANE + 1]      # (64, 1)  fused bias (+1.0 feed rows)
    w3 = slab_ref[HID_ROWS:SLAB_ROWS, 0:HID_ROWS]            # (16, 64) block-diag layer_3 (+bias col)

    # Fused layer_1∘layer_2 for all 4 batch-quarters in one MXU matmul.
    h = jnp.dot(w12, x_ref[...],
                precision=lax.Precision.HIGHEST,
                preferred_element_type=jnp.float32)          # (64, tbq)
    # Bias + ReLU on the VPU (the only element-wise work left).  BIAS_ROW rows
    # become exactly 1.0 and carry the layer_3 bias through the next matmul.
    h = jnp.maximum(h + b12, 0.0)
    # layer_3 on the MXU; result lands directly in the packed output layout.
    o_ref[...] = jnp.dot(w3, h,
                         precision=lax.Precision.HIGHEST,
                         preferred_element_type=jnp.float32).astype(o_ref.dtype)


def fuse_and_pack_params(params):
    """One-time prep: fuse layer_1/layer_2 (exact: no activation between them)
    and pack everything into a single (80, 128) f32 slab:

      rows [0, 64) : lanes [0, 8) -> block-diagonal fused W12 (per quarter),
                     lane 8       -> fused bias b12 (+ 1.0 in each BIAS_ROW)
      rows [64, 80): lanes [0, 64) -> block-diagonal W3 with the layer_3 bias
                     folded into the column that multiplies the constant-1 row.
    """
    w1, b1, w2, b2, w3, b3 = params                 # w: (in, out), b: (1, out)
    hp = lax.Precision.HIGHEST
    w12 = jnp.dot(w1, w2, precision=hp)             # (2, 10)   exact fusion
    b12 = jnp.dot(b1, w2, precision=hp) + b2        # (1, 10)

    slab = jnp.zeros(SLAB_SHAPE, jnp.float32)
    for q in range(NQ):
        r0 = q * QROWS
        # fused W12: hidden row (q, k) reads x0 from input row q, x1 from row NQ+q
        slab = slab.at[r0:r0 + HID, q].set(w12[0])
        slab = slab.at[r0:r0 + HID, NQ + q].set(w12[1])
        # fused bias column; BIAS_ROW pinned to 1.0 to carry b3 through layer_3
        slab = slab.at[r0:r0 + HID, _B12_LANE].set(b12[0])
        slab = slab.at[r0 + BIAS_ROW, _B12_LANE].set(1.0)
        # layer_3 block for this quarter (+ its bias in the BIAS_ROW column)
        o0 = HID_ROWS + q * OUT_C
        slab = slab.at[o0:o0 + OUT_C, r0:r0 + HID].set(w3.T)
        slab = slab.at[o0:o0 + OUT_C, r0 + BIAS_ROW].set(b3[0])
    return slab


def _round_up(v, m):
    return ((v + m - 1) // m) * m


def multiclass_classifier_forward(x, slab, *, block_b=131072):
    """x: [B, 2] float32 -> logits [B, 4] float32."""
    B = x.shape[0]

    # --- tile sizing ---------------------------------------------------------
    # block_b = batch elements per grid step; rounded to a multiple of NQ*LANE
    # and clamped so double-buffered tiles stay well inside VMEM on every
    # generation (worst case ~24 MiB < v7x's 64 MiB physical VMEM).
    block_b = max(NQ * LANE, min(int(block_b), 1 << 19))
    block_b = _round_up(block_b, NQ * LANE)
    tbq_cap = block_b // NQ                         # lane width per tile

    bq = -(-B // NQ)                                # quarter length (ceil)
    # aim for >= 2 grid steps when the batch allows (v7x megacore sharding)
    tbq = min(tbq_cap, _round_up(-(-bq // 2), LANE))
    tbq = max(tbq, LANE)
    bpq = _round_up(bq, tbq)                        # padded quarter length
    Bp = NQ * bpq
    grid = bpq // tbq

    # --- pack: [B, 2] -> (8, Bp/4), dense on both sublanes and lanes ---------
    xf = x.astype(jnp.float32)
    if Bp != B:
        xf = jnp.pad(xf, ((0, Bp - B), (0, 0)))
    x4 = xf.T.reshape(IN_F, NQ, bpq).reshape(IN_ROWS, bpq)

    out16 = pl.pallas_call(
        _mlp_kernel,
        out_shape=jax.ShapeDtypeStruct((OUT_ROWS, bpq), jnp.float32),
        grid=(grid,),
        in_specs=[
            pl.BlockSpec(SLAB_SHAPE, lambda i: (0, 0)),       # params: VMEM-resident
            pl.BlockSpec((IN_ROWS, tbq), lambda i: (0, i)),   # x tile (dense)
        ],
        out_specs=pl.BlockSpec((OUT_ROWS, tbq), lambda i: (0, i)),
        compiler_params=pltpu.CompilerParams(
            dimension_semantics=("parallel",),
            vmem_limit_bytes=32 * 1024 * 1024,
        ),
    )(slab, x4)

    # --- unpack: (16, Bp/4) -> [B, 4] ----------------------------------------
    out = out16.reshape(NQ, OUT_C, bpq).transpose(0, 2, 1).reshape(Bp, OUT_C)
    return out[:B]


def init_params(key):
    """Deterministic init mimicking torch.nn.Linear default U[-1/sqrt(in), 1/sqrt(in)].
    Weights stored as (in_features, out_features)."""
    dims = [(IN_F, HID), (HID, HID), (HID, OUT_C)]
    params = []
    for (fan_in, fan_out) in dims:
        key, kw, kb = jax.random.split(key, 3)
        bound = 1.0 / (fan_in ** 0.5)
        w = jax.random.uniform(kw, (fan_in, fan_out), jnp.float32, -bound, bound)
        b = jax.random.uniform(kb, (1, fan_out), jnp.float32, -bound, bound)
        params += [w, b]
    return tuple(params)


def reference_forward(x, params):
    """Plain-JAX reference (unfused) for correctness checking."""
    w1, b1, w2, b2, w3, b3 = params
    hp = lax.Precision.HIGHEST
    h = jnp.dot(x, w1, precision=hp) + b1
    h = jnp.dot(h, w2, precision=hp) + b2
    h = jnp.maximum(h, 0.0)
    return jnp.dot(h, w3, precision=hp) + b3


if __name__ == "__main__":
    key = jax.random.PRNGKey(0)
    key, kx = jax.random.split(key)

    B = 8  # small batch for the demo
    x = jax.random.normal(kx, (B, IN_F), dtype=jnp.float32)
    params = init_params(key)
    slab = fuse_and_pack_params(params)

    fwd = jax.jit(multiclass_classifier_forward)
    out = fwd(x, slab)
    out = jax.block_until_ready(out)

    ref = reference_forward(x, params)
    assert out.shape == (B, OUT_C), out.shape
    # 1e-4 tolerance: kernel fuses W1@W2 and runs both layers through the MXU
    # (HIGHEST precision), so only f32 rounding/associativity differences remain.
    assert jnp.allclose(out, ref, atol=1e-4, rtol=1e-4), "mismatch vs reference"

    print("KERNEL_OK")
</pallas_src>

<mosaic_0001>
module attributes {stable_mosaic.version = 11 : i64} {
  func.func @_mlp_kernel(%arg0: i32, %arg1: memref<80x128xf32, #tpu.memory_space<vmem>>, %arg2: memref<8x128xf32, #tpu.memory_space<vmem>>, %arg3: memref<16x128xf32, #tpu.memory_space<vmem>>) attributes {dimension_semantics = [#tpu.dimension_semantics<parallel>], iteration_bounds = array<i64: 1>, scalar_prefetch = 0 : i64, scratch_operands = 0 : i64, tpu.core_type = #tpu.core_type<tc>, window_params = [{pipeline_mode = #tpu.pipeline_mode<synchronous>, transform_indices = @transform_0, window_bounds = array<i64: 80, 128>}, {transform_indices = @transform_1, window_bounds = array<i64: 8, 128>}, {transform_indices = @transform_2, window_bounds = array<i64: 16, 128>}]} {
    %c0 = arith.constant 0 : index
    %c0_0 = arith.constant 0 : index
    %0 = vector.load %arg1[%c0, %c0_0] : memref<80x128xf32, #tpu.memory_space<vmem>>, vector<64x8xf32>
    %c0_1 = arith.constant 0 : index
    %c8 = arith.constant 8 : index
    %1 = vector.load %arg1[%c0_1, %c8] : memref<80x128xf32, #tpu.memory_space<vmem>>, vector<64x1xf32>
    %c64 = arith.constant 64 : index
    %c0_2 = arith.constant 0 : index
    %2 = vector.load %arg1[%c64, %c0_2] : memref<80x128xf32, #tpu.memory_space<vmem>>, vector<16x64xf32>
    %c0_3 = arith.constant 0 : index
    %c0_4 = arith.constant 0 : index
    %3 = vector.load %arg2[%c0_3, %c0_4] : memref<8x128xf32, #tpu.memory_space<vmem>>, vector<8x128xf32>
    %cst = arith.constant dense<0.000000e+00> : vector<64x128xf32>
    %4 = tpu.matmul %0, %3, %cst {dimension_numbers = #tpu.dot_dimension_numbers<[1], [0], [0], [1], [0, 0, 1, 1], [], []>, precision = #tpu.contract_precision<fp32>} : vector<64x8xf32>, vector<8x128xf32>, vector<64x128xf32> -> vector<64x128xf32>
    %5 = vector.broadcast %1 : vector<64x1xf32> to vector<64x128xf32>
    %6 = arith.addf %4, %5 : vector<64x128xf32>
    %cst_5 = arith.constant 0.000000e+00 : f32
    %7 = vector.broadcast %cst_5 : f32 to vector<64x128xf32>
    %8 = arith.maximumf %6, %7 : vector<64x128xf32>
    %cst_6 = arith.constant dense<0.000000e+00> : vector<16x128xf32>
    %9 = tpu.matmul %2, %8, %cst_6 {dimension_numbers = #tpu.dot_dimension_numbers<[1], [0], [0], [1], [0, 0, 1, 1], [], []>, precision = #tpu.contract_precision<fp32>} : vector<16x64xf32>, vector<64x128xf32>, vector<16x128xf32> -> vector<16x128xf32>
    %c0_7 = arith.constant 0 : index
    %c0_8 = arith.constant 0 : index
    %10 = vector.load %arg3[%c0_7, %c0_8] : memref<16x128xf32, #tpu.memory_space<vmem>>, vector<16x128xf32>
    tpu.vector_store %arg3[%c0_7, %c0_8], %9 {strides = array<i32>} : memref<16x128xf32, #tpu.memory_space<vmem>>, vector<16x128xf32>,
    return
  }
  func.func @transform_0(%arg0: i32) -> (i32, i32) {
    %c0_i32 = arith.constant 0 : i32
    %c0_i32_0 = arith.constant 0 : i32
    %c0_i32_1 = arith.constant 0 : i32
    return %c0_i32, %c0_i32_0 : i32, i32
  }
  func.func @transform_1(%arg0: i32) -> (i32, i32) {
    %c0_i32 = arith.constant 0 : i32
    %c0_i32_0 = arith.constant 0 : i32
    return %c0_i32, %arg0 : i32, i32
  }
  func.func @transform_2(%arg0: i32) -> (i32, i32) {
    %c0_i32 = arith.constant 0 : i32
    %c0_i32_0 = arith.constant 0 : i32
    return %c0_i32, %arg0 : i32, i32
  }
}

</mosaic_0001>

<bundles_post_ra>
// kernel: multiclass_classifier_forward.1
= control target key start
LH: loop header
LB: loop body
LE: loop exit
PB: predicated region body
PF: predicated region fallthrough
CT: control target
= control target key end

     0   :  { %7 = vsyncpa [#allocation3], 0  ;;  %s783_s12 = smov [#allocation2]   ;;  %s784_s14 = smov 128   ;;  %s1003_s0 = inlined_call_operand.hbm [shape: f32[80,128], index: 0, kind: input, shape index: {}]   ;;  %s1004_s1 = inlined_call_operand.vmem [shape: f32[8,128], index: 1, kind: input, shape index: {}]   ;;  %s1005_s2 = inlined_call_operand.vmem [shape: f32[16,128], index: 2, kind: output, shape index: {}]  }
   0x1   :  { %s12_s11 = sshll.u32 %s1003_s0, 4  ;;  %s14_s13 = sshll.u32 %s783_s12, 4  ;;  %s13_s11 = int_to_ptr.hbm [resolvable:$true] %s12_s11  ;;  %s15_s13 = int_to_ptr.vmem [resolvable:$true] %s14_s13 }
   0x2   :  { %s785_s15 = smov 8  }
   0x3   :  { %20 = dma.hbm_to_vmem [thread:$0]  %s13_s11, 1280, %s15_s13, [#allocation3], %s784_s14, %s784_s14, %s785_s15  }
   0x4   :  { %781 = dma.done.wait [#allocation3], 1280  }
   0x5   :  { %782 = vsyncadd [#allocation3], 4294966016  ;;  %v786_v0 = vmov 8   ;;  %vm78_vm0 = vcmask 64512   ;;  %v805_v1 = vld [vmem:[#allocation2 + $0x28] sm:$0xff]  ;;  %v37_v2 = vld [vmem:[%s1004_s1] sm:$0xff] }
   0x6   :  { %755 = vset.pattern.permute.xlu1 %v786_v0  ;;  %754 = vset.pattern.permute.xlu0 %v786_v0  ;;  %v27_v3 = vld [vmem:[#allocation2] sm:$0xff]  ;;  %v110_v4 = vand.u32 4294901760, %v37_v2  ;;  %v34_v6 = vld [vmem:[#allocation2 + $0x38] sm:$0xff]  ;;  %v28_v7 = vld [vmem:[#allocation2 + $0x8] sm:$0xff]  ;;  %v89_v47 = vsel %vm78_vm0, %v805_v1, 0  ;;  %vm466_vm1 = vcmask 523264  }
   0x7   :  { %756 = vset.pattern.permute.xlu2 %v786_v0  ;;  %65 = vperm.xlu1 %755, %v805_v1   ;;  %v79_v5 = vsel %vm78_vm0, %v27_v3, 0  ;;  %v93_v9 = vsel %vm78_vm0, %v34_v6, 0  ;;  %v81_v12 = vsel %vm78_vm0, %v28_v7, 0  ;;  %v29_v13 = vld [vmem:[#allocation2 + $0x10] sm:$0xff]  ;;  %v30_v14 = vld [vmem:[#allocation2 + $0x18] sm:$0xff]  ;;  %v31_v20 = vld [vmem:[#allocation2 + $0x20] sm:$0xff] }
   0x8   :  { %v812_v8 = vand.u32 4294901760, %v79_v5  ;;  %75 = vperm.xlu0 %754, %v34_v6   ;;  %111 = vmatpush.msra.mxu0 %v110_v4  ;;  %v815_v10 = vand.u32 4294901760, %v93_v9  ;;  %v193_v11 = vsub.f32 %v37_v2, %v110_v4  ;;  %v819_v16 = vand.u32 4294901760, %v81_v12  ;;  %v33_v25 = vld [vmem:[#allocation2 + $0x30] sm:$0xff] }
   0x9   :  { %748 = vmatpush.msra.mxu2 %v110_v4  ;;  %55 = vperm.xlu2 %756, %v30_v14   ;;  %v83_v22 = vsel %vm78_vm0, %v29_v13, 0  ;;  %v85_v35 = vsel %vm78_vm0, %v30_v14, 0  ;;  %v87_v41 = vsel %vm78_vm0, %v31_v20, 0  ;;  %v152_v48 = vand.u32 4294901760, %v89_v47 }
   0xa   :  { %v113_v15 = vsub.f32 %v79_v5, %v812_v8  ;;  %v822_v17 = vsub.f32 %v93_v9, %v815_v10  ;;  %v194_v18 = vand.u32 4294901760, %v193_v11  ;;  %v121_v21 = vsub.f32 %v81_v12, %v819_v16 }
   0xb   :  { %248 = vmatpush.msrb.mxu2 %v193_v11  ;;  %v827_v28 = vand.u32 4294901760, %v83_v22  ;;  %v136_v38 = vand.u32 4294901760, %v85_v35  ;;  %v144_v42 = vand.u32 4294901760, %v87_v41  ;;  %v153_v51 = vsub.f32 %v89_v47, %v152_v48 }
   0xc   :  { %v114_v19 = vand.u32 4294901760, %v113_v15  ;;  %v170_v23 = vand.u32 4294901760, %v822_v17  ;;  %v195_v24 = vsub.f32 %v193_v11, %v194_v18  ;;  %374 = vmatpush.msrb.mxu0 %v194_v18  ;;  %v122_v27 = vand.u32 4294901760, %v121_v21 }
   0xd   :  { %v129_v34 = vsub.f32 %v83_v22, %v827_v28  ;;  %v137_v40 = vsub.f32 %v85_v35, %v136_v38  ;;  %v145_v45 = vsub.f32 %v87_v41, %v144_v42  ;;  %v91_v53 = vsel %vm78_vm0, %v33_v25, 0 }
   0xe   :  { %v115_v26 = vsub.f32 %v113_v15, %v114_v19  ;;  %v171_v29 = vsub.f32 %v822_v17, %v170_v23  ;;  %v196_v30 = vand.u32 4294901760, %v195_v24  ;;  %v123_v33 = vsub.f32 %v121_v21, %v122_v27 }
   0xf   :  { %60 = vperm.xlu1 %755, %v31_v20   ;;  %v130_v37 = vand.u32 4294901760, %v129_v34  ;;  %v138_v44 = vand.u32 4294901760, %v137_v40  ;;  %v146_v50 = vand.u32 4294901760, %v145_v45  ;;  %v160_v54 = vand.u32 4294901760, %v91_v53 }
  0x10   :  { %v116_v31 = vand.u32 4294901760, %v115_v26  ;;  %70 = vperm.xlu0 %754, %v33_v25   ;;  %v172_v32 = vand.u32 4294901760, %v171_v29  ;;  %197 = vmatpush.msra.mxu1 %v196_v30  ;;  %v124_v36 = vand.u32 4294901760, %v123_v33  ;;  %v154_v56 = vand.u32 4294901760, %v153_v51 }
  0x11   :  { %749 = vmatpush.msra.mxu3 %v196_v30  ;;  %199 = vmatmul.f32.vlgmr.msra.gmra.mxu1 %v812_v8  ;;  %v131_v39 = vsub.f32 %v129_v34, %v130_v37  ;;  %v139_v46 = vsub.f32 %v137_v40, %v138_v44  ;;  %v147_v52 = vsub.f32 %v145_v45, %v146_v50 }
  0x12   :  { %117 = vmatmul.f32.vlgmr.msra.gmra.mxu0 %v116_v31  ;;  %173 = vmatmul.f32.vlgmr.msra.gmra.mxu2 %v172_v32  ;;  %v161_v57 = vsub.f32 %v91_v53, %v160_v54  ;;  %v155_v58 = vsub.f32 %v153_v51, %v154_v56 }
  0x13   :  { %227 = vmatmul.f32.vlgmr.msra.gmra.mxu3 %v815_v10  ;;  %424 = vmatpush.msrb.mxu1 %v110_v4  ;;  %v132_v43 = vand.u32 4294901760, %v131_v39  ;;  %v140_v49 = vand.u32 4294901760, %v139_v46  ;;  %v148_v55 = vand.u32 4294901760, %v147_v52 }
  0x14   :  { %306 = vmatpush.msrb.mxu3 %v110_v4  ;;  %50 = vperm.xlu2 %756, %v29_v13   ;;  %v156_v59 = vand.u32 4294901760, %v155_v58  ;;  %v162_v60 = vand.u32 4294901760, %v161_v57 }
  0x16   :  { %v163_v61 = vsub.f32 %v161_v57, %v162_v60 }
  0x17   :  { %40 = vperm.xlu1 %755, %v27_v3  }
  0x18   :  { %45 = vperm.xlu0 %754, %v28_v7   ;;  %v164_v62 = vand.u32 4294901760, %v163_v61 }
  0x19   :  { %203 = vmatmul.f32.gmra.mxu1 %v819_v16 }
  0x1a   :  { %125 = vmatmul.f32.gmra.mxu0 %v124_v36  ;;  %251 = vmatmul.f32.vlgmr.msrb.gmra.mxu2 %v113_v15 }
  0x1b   :  { %310 = vmatmul.f32.vlgmr.msrb.gmra.mxu3 %v114_v19 }
  0x21   :  { %207 = vmatmul.f32.gmra.mxu1 %v827_v28 }
  0x22   :  { %133 = vmatmul.f32.gmra.mxu0 %v132_v43  ;;  %256 = vmatmul.f32.gmra.mxu2 %v121_v21 }
  0x23   :  { %316 = vmatmul.f32.gmra.mxu3 %v122_v27 }
  0x29   :  { %211 = vmatmul.f32.gmra.mxu1 %v136_v38 }
  0x2a   :  { %141 = vmatmul.f32.gmra.mxu0 %v140_v49  ;;  %261 = vmatmul.f32.gmra.mxu2 %v129_v34 }
  0x2b   :  { %322 = vmatmul.f32.gmra.mxu3 %v130_v37 }
  0x31   :  { %215 = vmatmul.f32.gmra.mxu1 %v144_v42 }
  0x32   :  { %149 = vmatmul.f32.gmra.mxu0 %v148_v55  ;;  %266 = vmatmul.f32.gmra.mxu2 %v137_v40 }
  0x33   :  { %328 = vmatmul.f32.gmra.mxu3 %v138_v44 }
  0x39   :  { %219 = vmatmul.f32.gmra.mxu1 %v152_v48 }
  0x3a   :  { %157 = vmatmul.f32.gmra.mxu0 %v156_v59  ;;  %271 = vmatmul.f32.gmra.mxu2 %v145_v45 }
  0x3b   :  { %334 = vmatmul.f32.gmra.mxu3 %v146_v50 }
  0x41   :  { %223 = vmatmul.f32.gmra.mxu1 %v160_v54 }
  0x42   :  { %165 = vmatmul.f32.gmra.mxu0 %v164_v62  ;;  %276 = vmatmul.f32.gmra.mxu2 %v153_v51 }
  0x43   :  { %340 = vmatmul.f32.gmra.mxu3 %v154_v56 }
  0x49   :  { %426 = vmatmul.f32.vlgmr.msrb.gmra.mxu1 %v812_v8 }
  0x4a   :  { %376 = vmatmul.f32.vlgmr.msrb.gmra.mxu0 %v812_v8  ;;  %281 = vmatmul.f32.gmra.mxu2 %v161_v57 }
  0x4b   :  { %346 = vmatmul.f32.gmra.mxu3 %v162_v60 }
  0x51   :  { %430 = vmatmul.f32.gmra.mxu1 %v819_v16 }
  0x52   :  { %380 = vmatmul.f32.gmra.mxu0 %v819_v16  ;;  %286 = vmatmul.f32.gmra.mxu2 %v822_v17 }
  0x53   :  { %352 = vmatmul.f32.gmra.mxu3 %v170_v23 }
  0x59   :  { %434 = vmatmul.f32.gmra.mxu1 %v827_v28 }
  0x5a   :  { %384 = vmatmul.f32.gmra.mxu0 %v827_v28 }
  0x61   :  { %438 = vmatmul.f32.gmra.mxu1 %v136_v38 }
  0x62   :  { %388 = vmatmul.f32.gmra.mxu0 %v136_v38 }
  0x63   :  { %v56_v8 = vpop.permute.xlu2 %55 }
  0x69   :  { %442 = vmatmul.f32.gmra.mxu1 %v144_v42 }
  0x6a   :  { %392 = vmatmul.f32.gmra.mxu0 %v144_v42 }
  0x6e   :  { %v51_v17 = vpop.permute.xlu2 %50 }
  0x71   :  { %446 = vmatmul.f32.gmra.mxu1 %v152_v48 }
  0x72   :  { %396 = vmatmul.f32.gmra.mxu0 %v152_v48 }
  0x79   :  { %v66_v63 = vpop.permute.xlu1 %65  ;;  %450 = vmatmul.f32.gmra.mxu1 %v160_v54 }
  0x7a   :  { %400 = vmatmul.f32.gmra.mxu0 %v160_v54  ;;  %v851_v0 = vpop.permute.xlu0 %75 }
  0x81   :  { %454 = vmatmul.f32.gmra.mxu1 %v815_v10  ;;  %v61_v1 = vpop.permute.xlu1 %60 }
  0x82   :  { %404 = vmatmul.f32.gmra.mxu0 %v815_v10  ;;  %v71_v2 = vpop.permute.xlu0 %70 }
  0x89   :  { %v41_v3 = vpop.permute.xlu1 %40 }
  0x8a   :  { %v46_v9 = vpop.permute.xlu0 %45 }
  0x8e   :  { %v200_v5 = vpop.f32.mrf.mxu1 }
  0x8f   :  { %v118_v4 = vpop.f32.mrf.mxu0 }
  0x90   :  { %v119_v6 = vadd.f32 %v118_v4, %v41_v3 }
  0x92   :  { %v201_v7 = vadd.f32 %v200_v5, %v119_v6 }
  0x95   :  { %v174_v11 = vpop.f32.mrf.mxu2 }
  0x96   :  { %v855_v12 = vpop.f32.mrf.mxu3  ;;  %v204_v14 = vpop.f32.mrf.mxu1 }
  0x97   :  { %v126_v13 = vpop.f32.mrf.mxu0 }
  0x98   :  { %v127_v15 = vadd.f32 %v126_v13, %v46_v9 }
  0x9a   :  { %v857_v16 = vadd.f32 %v204_v14, %v127_v15 }
  0x9d   :  { %v252_v18 = vpop.f32.mrf.mxu2 }
  0x9e   :  { %v311_v10 = vpop.f32.mrf.mxu3  ;;  %v253_v19 = vadd.f32 %v252_v18, %v201_v7  ;;  %v208_v21 = vpop.f32.mrf.mxu1 }
  0x9f   :  { %v134_v20 = vpop.f32.mrf.mxu0 }
  0xa0   :  { %v135_v22 = vadd.f32 %v134_v20, %v51_v17  ;;  %v312_v23 = vadd.f32 %v311_v10, %v253_v19 }
  0xa2   :  { %v209_v24 = vadd.f32 %v208_v21, %v135_v22 }
  0xa5   :  { %v257_v36 = vpop.f32.mrf.mxu2 }
  0xa6   :  { %v212_v26 = vpop.f32.mrf.mxu1  ;;  %v317_v38 = vpop.f32.mrf.mxu3  ;;  %v258_v19 = vadd.f32 %v257_v36, %v857_v16  ;;  %v35_v36 = vld [vmem:[#allocation2 + $0x40] sm:$0xff] }
  0xa7   :  { %v142_v25 = vpop.f32.mrf.mxu0 }
  0xa8   :  { %v143_v27 = vadd.f32 %v142_v25, %v56_v8  ;;  %v175_v8 = vadd.f32 %v174_v11, %v851_v0 }
  0xaa   :  { %v213_v28 = vadd.f32 %v212_v26, %v143_v27  ;;  %v229_v22 = vadd.f32 %v855_v12, %v175_v8 }
  0xad   :  { %v262_v41 = vpop.f32.mrf.mxu2 }
  0xae   :  { %v216_v30 = vpop.f32.mrf.mxu1  ;;  %v323_v44 = vpop.f32.mrf.mxu3  ;;  %v263_v14 = vadd.f32 %v262_v41, %v209_v24 }
  0xaf   :  { %v150_v29 = vpop.f32.mrf.mxu0 }
  0xb0   :  { %v151_v31 = vadd.f32 %v150_v29, %v61_v1  ;;  %v324_v26 = vadd.f32 %v323_v44, %v263_v14 }
  0xb2   :  { %v217_v32 = vadd.f32 %v216_v30, %v151_v31 }
  0xb5   :  { %v267_v47 = vpop.f32.mrf.mxu2 }
  0xb6   :  { %v220_v34 = vpop.f32.mrf.mxu1  ;;  %v329_v50 = vpop.f32.mrf.mxu3  ;;  %v268_v9 = vadd.f32 %v267_v47, %v213_v28  ;;  %v318_v28 = vadd.f32 %v317_v38, %v258_v19 }
  0xb7   :  { %v158_v33 = vpop.f32.mrf.mxu0 }
  0xb8   :  { %v159_v35 = vadd.f32 %v158_v33, %v66_v63 }
  0xba   :  { %v221_v37 = vadd.f32 %v220_v34, %v159_v35 }
  0xbd   :  { %v272_v53 = vpop.f32.mrf.mxu2 }
  0xbe   :  { %v224_v40 = vpop.f32.mrf.mxu1  ;;  %v335_v54 = vpop.f32.mrf.mxu3  ;;  %v273_v5 = vadd.f32 %v272_v53, %v217_v32 }
  0xbf   :  { %v166_v39 = vpop.f32.mrf.mxu0 }
  0xc0   :  { %v167_v61 = vadd.f32 %v166_v39, %v71_v2  ;;  %v336_v15 = vadd.f32 %v335_v54, %v273_v5 }
  0xc2   :  { %v225_v3 = vadd.f32 %v224_v40, %v167_v61 }
  0xc5   :  { %v277_v57 = vpop.f32.mrf.mxu2 }
  0xc6   :  { %v427_v43 = vpop.f32.mrf.mxu1  ;;  %v341_v58 = vpop.f32.mrf.mxu3  ;;  %v278_v4 = vadd.f32 %v277_v57, %v221_v37  ;;  %v36_v57 = vld [vmem:[#allocation2 + $0x48] sm:$0xff] }
  0xc7   :  { %v377_v42 = vpop.f32.mrf.mxu0 }
  0xc8   :  { %v378_v45 = vadd.f32 %v377_v42, %v312_v23  ;;  %v342_v13 = vadd.f32 %v341_v58, %v278_v4  ;;  %v330_v23 = vadd.f32 %v329_v50, %v268_v9 }
  0xca   :  { %v859_v46 = vadd.f32 %v427_v43, %v378_v45  ;;  %v468_v43 = vsel %vm466_vm1, %v35_v36, 0 }
  0xcb   :  { %v874_v53 = vand.u32 4294901760, %v468_v43 }
  0xcc   :  { %v458_v58 = vmax.f32 %v859_v46, 0.0 }
  0xcd   :  { %v282_v62 = vpop.f32.mrf.mxu2 }
  0xce   :  { %v431_v49 = vpop.f32.mrf.mxu1  ;;  %v347_v6 = vpop.f32.mrf.mxu3  ;;  %v283_v7 = vadd.f32 %v282_v62, %v225_v3 }
  0xcf   :  { %v381_v48 = vpop.f32.mrf.mxu0 }
  0xd0   :  { %v348_v17 = vadd.f32 %v347_v6, %v283_v7  ;;  %v382_v33 = vadd.f32 %v381_v48, %v318_v28  ;;  %v906_v6 = vand.u32 4294901760, %v458_v58 }
  0xd2   :  { %v432_v38 = vadd.f32 %v431_v49, %v382_v33 }
  0xd4   :  { %v459_v54 = vmax.f32 %v432_v38, 0.0 }
  0xd5   :  { %v287_v18 = vpop.f32.mrf.mxu2 }
  0xd6   :  { %v435_v52 = vpop.f32.mrf.mxu1  ;;  %v288_v27 = vadd.f32 %v287_v18, %v229_v22  ;;  %v353_v24 = vpop.f32.mrf.mxu3  ;;  %v898_v3 = vand.u32 4294901760, %v459_v54 }
  0xd7   :  { %v385_v51 = vpop.f32.mrf.mxu0 }
  0xd8   :  { %v386_v30 = vadd.f32 %v385_v51, %v324_v26  ;;  %v354_v34 = vadd.f32 %v353_v24, %v288_v27 }
  0xda   :  { %v436_v37 = vadd.f32 %v435_v52, %v386_v30 }
  0xdc   :  { %v460_v48 = vmax.f32 %v436_v37, 0.0 }
  0xde   :  { %v439_v56 = vpop.f32.mrf.mxu1 }
  0xdf   :  { %v389_v55 = vpop.f32.mrf.mxu0 }
  0xe0   :  { %v390_v29 = vadd.f32 %v389_v55, %v330_v23 }
  0xe2   :  { %v440_v16 = vadd.f32 %v439_v56, %v390_v29 }
  0xe4   :  { %v461_v44 = vmax.f32 %v440_v16, 0.0 }
  0xe6   :  { %v443_v60 = vpop.f32.mrf.mxu1  ;;  %v876_v55 = vand.u32 4294901760, %v461_v44 }
  0xe7   :  { %v393_v59 = vpop.f32.mrf.mxu0 }
  0xe8   :  { %v394_v2 = vadd.f32 %v393_v59, %v336_v15  ;;  %v884_v59 = vand.u32 4294901760, %v460_v48  ;;  %v901_v46 = vsub.f32 %v461_v44, %v876_v55 }
  0xea   :  { %v444_v31 = vadd.f32 %v443_v60, %v394_v2  ;;  %v909_v7 = vsub.f32 %v460_v48, %v884_v59  ;;  %v548_v19 = vand.u32 4294901760, %v901_v46  ;;  %v931_v2 = vsub.f32 %v458_v58, %v906_v6 }
  0xec   :  { %v462_v12 = vmax.f32 %v444_v31, 0.0  ;;  %v549_v27 = vsub.f32 %v901_v46, %v548_v19 }
  0xee   :  { %v447_v1 = vpop.f32.mrf.mxu1  ;;  %v869_v50 = vand.u32 4294901760, %v462_v12  ;;  %v550_v31 = vand.u32 4294901760, %v549_v27 }
  0xef   :  { %v397_v63 = vpop.f32.mrf.mxu0 }
  0xf0   :  { %v398_v10 = vadd.f32 %v397_v63, %v342_v13  ;;  %v887_v60 = vsub.f32 %v462_v12, %v869_v50  ;;  %v895_v63 = vsub.f32 %v468_v43, %v874_v53 }
  0xf2   :  { %v448_v0 = vadd.f32 %v447_v1, %v398_v10  ;;  %v471_v1 = vsel %vm466_vm1, %v36_v57, 0  ;;  %v542_v8 = vand.u32 4294901760, %v887_v60  ;;  %v499_v14 = vand.u32 4294901760, %v895_v63 }
  0xf3   :  { %v920_v15 = vand.u32 4294901760, %v471_v1 }
  0xf4   :  { %v463_v35 = vmax.f32 %v448_v0, 0.0  ;;  %v543_v22 = vsub.f32 %v887_v60, %v542_v8  ;;  %v500_v23 = vsub.f32 %v895_v63, %v499_v14  ;;  %v566_v0 = vand.u32 4294901760, %v931_v2 }
  0xf6   :  { %v451_v21 = vpop.f32.mrf.mxu1  ;;  %v867_v45 = vand.u32 4294901760, %v463_v35  ;;  %v501_v24 = vand.u32 4294901760, %v500_v23 }
  0xf7   :  { %v401_v20 = vpop.f32.mrf.mxu0 }
  0xf8   :  { %v402_v25 = vadd.f32 %v401_v20, %v348_v17  ;;  %v879_v56 = vsub.f32 %v463_v35, %v867_v45  ;;  %v923_v17 = vsub.f32 %v459_v54, %v898_v3  ;;  %v554_v20 = vand.u32 4294901760, %v909_v7 }
  0xfa   :  { %v452_v11 = vadd.f32 %v451_v21, %v402_v25  ;;  %v536_v5 = vand.u32 4294901760, %v879_v56  ;;  %v942_v25 = vsub.f32 %v471_v1, %v920_v15  ;;  %v560_v29 = vand.u32 4294901760, %v923_v17 }
  0xfb   :  { %v555_v28 = vsub.f32 %v909_v7, %v554_v20 }
  0xfc   :  { %v464_v32 = vmax.f32 %v452_v11, 0.0  ;;  %v537_v10 = vsub.f32 %v879_v56, %v536_v5  ;;  %v544_v11 = vand.u32 4294901760, %v543_v22  ;;  %v507_v30 = vand.u32 4294901760, %v942_v25 }
  0xfd   :  { %v556_v33 = vand.u32 4294901760, %v555_v28 }
  0xfe   :  { %v455_v40 = vpop.f32.mrf.mxu1  ;;  %v864_v41 = vand.u32 4294901760, %v464_v32  ;;  %v538_v26 = vand.u32 4294901760, %v537_v10  ;;  %v508_v16 = vsub.f32 %v942_v25, %v507_v30 }
  0xff   :  { %v405_v39 = vpop.f32.mrf.mxu0 }
 0x100   :  { %v406_v42 = vadd.f32 %v405_v39, %v354_v34  ;;  %v872_v51 = vsub.f32 %v464_v32, %v864_v41  ;;  %v561_v32 = vsub.f32 %v923_v17, %v560_v29  ;;  %v567_v34 = vsub.f32 %v931_v2, %v566_v0 }
 0x101   :  { %v509_v37 = vand.u32 4294901760, %v508_v16 }
 0x102   :  { %v456_v47 = vadd.f32 %v455_v40, %v406_v42  ;;  %v530_v62 = vand.u32 4294901760, %v872_v51  ;;  %v562_v35 = vand.u32 4294901760, %v561_v32  ;;  %v568_v36 = vand.u32 4294901760, %v567_v34 }
 0x104   :  { %v465_v52 = vmax.f32 %v456_v47, 0.0  ;;  %v531_v13 = vsub.f32 %v872_v51, %v530_v62 }
 0x106   :  { %v881_v49 = vand.u32 4294901760, %v465_v52  ;;  %v532_v21 = vand.u32 4294901760, %v531_v13 }
 0x108   :  { %v890_v61 = vsub.f32 %v465_v52, %v881_v49  ;;  %482 = vmatpush.msra.mxu2 %v881_v49 }
 0x10a   :  { %v524_v4 = vand.u32 4294901760, %v890_v61  ;;  %484 = vmatpush.msra.mxu2 %v864_v41 }
 0x10c   :  { %v525_v9 = vsub.f32 %v890_v61, %v524_v4  ;;  %486 = vmatpush.msra.mxu2 %v867_v45 }
 0x10e   :  { %488 = vmatpush.msra.mxu2 %v869_v50  ;;  %v526_v18 = vand.u32 4294901760, %v525_v9 }
 0x110   :  { %490 = vmatpush.msra.mxu2 %v876_v55  ;;  %527 = vmatpush.msra.mxu3 %v526_v18 }
 0x112   :  { %492 = vmatpush.msra.mxu2 %v884_v59  ;;  %533 = vmatpush.msra.mxu3 %v532_v21 }
 0x114   :  { %494 = vmatpush.msra.mxu2 %v898_v3  ;;  %539 = vmatpush.msra.mxu3 %v538_v26 }
 0x116   :  { %496 = vmatpush.msra.mxu2 %v906_v6  ;;  %545 = vmatpush.msra.mxu3 %v544_v11 }
 0x117   :  { %502 = vmatmul.f32.vlgmr.msra.gmra.mxu2 %v501_v24 }
 0x118   :  { %589 = vmatpush.msrb.mxu2 %v890_v61  ;;  %551 = vmatpush.msra.mxu3 %v550_v31 }
 0x11a   :  { %592 = vmatpush.msrb.mxu2 %v872_v51  ;;  %557 = vmatpush.msra.mxu3 %v556_v33 }
 0x11c   :  { %595 = vmatpush.msrb.mxu2 %v879_v56  ;;  %563 = vmatpush.msra.mxu3 %v562_v35 }
 0x11e   :  { %598 = vmatpush.msrb.mxu2 %v887_v60  ;;  %569 = vmatpush.msra.mxu3 %v568_v36 }
 0x11f   :  { %571 = vmatmul.f32.vlgmr.msra.gmra.mxu3 %v874_v53  ;;  %510 = vmatmul.f32.gmra.mxu2 %v509_v37 }
 0x120   :  { %601 = vmatpush.msrb.mxu2 %v901_v46  ;;  %631 = vmatpush.msrb.mxu3 %v881_v49 }
 0x122   :  { %604 = vmatpush.msrb.mxu2 %v909_v7  ;;  %633 = vmatpush.msrb.mxu3 %v864_v41 }
 0x124   :  { %607 = vmatpush.msrb.mxu2 %v923_v17  ;;  %635 = vmatpush.msrb.mxu3 %v867_v45 }
 0x126   :  { %610 = vmatpush.msrb.mxu2 %v931_v2  ;;  %637 = vmatpush.msrb.mxu3 %v869_v50 }
 0x127   :  { %575 = vmatmul.f32.gmra.mxu3 %v920_v15  ;;  %613 = vmatmul.f32.vlgmr.msrb.gmra.mxu2 %v895_v63 }
 0x128   :  { %670 = vmatpush.msra.mxu2 %v524_v4  ;;  %639 = vmatpush.msrb.mxu3 %v876_v55 }
 0x12a   :  { %674 = vmatpush.msra.mxu2 %v530_v62  ;;  %641 = vmatpush.msrb.mxu3 %v884_v59 }
 0x12c   :  { %678 = vmatpush.msra.mxu2 %v536_v5  ;;  %643 = vmatpush.msrb.mxu3 %v898_v3 }
 0x12e   :  { %682 = vmatpush.msra.mxu2 %v542_v8  ;;  %645 = vmatpush.msrb.mxu3 %v906_v6 }
 0x12f   :  { %649 = vmatmul.f32.vlgmr.msrb.gmra.mxu3 %v499_v14  ;;  %618 = vmatmul.f32.gmra.mxu2 %v942_v25 }
 0x130   :  { %686 = vmatpush.msra.mxu2 %v548_v19  ;;  %717 = vmatpush.msra.mxu3 %v881_v49 }
 0x132   :  { %690 = vmatpush.msra.mxu2 %v554_v20  ;;  %719 = vmatpush.msra.mxu3 %v864_v41 }
 0x134   :  { %694 = vmatpush.msra.mxu2 %v560_v29  ;;  %721 = vmatpush.msra.mxu3 %v867_v45 }
 0x136   :  { %698 = vmatpush.msra.mxu2 %v566_v0  ;;  %723 = vmatpush.msra.mxu3 %v869_v50 }
 0x137   :  { %655 = vmatmul.f32.gmra.mxu3 %v507_v30  ;;  %700 = vmatmul.f32.vlgmr.msra.gmra.mxu2 %v874_v53 }
 0x138   :  { %725 = vmatpush.msra.mxu3 %v876_v55 }
 0x13a   :  { %727 = vmatpush.msra.mxu3 %v884_v59 }
 0x13c   :  { %729 = vmatpush.msra.mxu3 %v898_v3 }
 0x13e   :  { %731 = vmatpush.msra.mxu3 %v906_v6 }
 0x13f   :  { %733 = vmatmul.f32.vlgmr.msra.gmra.mxu3 %v874_v53  ;;  %704 = vmatmul.f32.gmra.mxu2 %v920_v15 }
 0x147   :  { %737 = vmatmul.f32.gmra.mxu3 %v920_v15 }
 0x19a   :  { %v503_v12 = vpop.f32.mrf.mxu2 }
 0x1a2   :  { %v572_v39 = vpop.f32.mrf.mxu3  ;;  %v511_v40 = vpop.f32.mrf.mxu2 }
 0x1a3   :  { %v573_v45 = vadd.f32 %v572_v39, %v503_v12 }
 0x1aa   :  { %v576_v41 = vpop.f32.mrf.mxu3  ;;  %v614_v42 = vpop.f32.mrf.mxu2 }
 0x1ab   :  { %v615_v48 = vadd.f32 %v614_v42, %v573_v45  ;;  %v577_v54 = vadd.f32 %v576_v41, %v511_v40 }
 0x1b2   :  { %v650_v43 = vpop.f32.mrf.mxu3  ;;  %v619_v38 = vpop.f32.mrf.mxu2 }
 0x1b3   :  { %v651_v50 = vadd.f32 %v650_v43, %v615_v48  ;;  %v620_v55 = vadd.f32 %v619_v38, %v577_v54 }
 0x1ba   :  { %v656_v44 = vpop.f32.mrf.mxu3  ;;  %v701_v47 = vpop.f32.mrf.mxu2 }
 0x1bb   :  { %v702_v51 = vadd.f32 %v701_v47, %v651_v50  ;;  %v657_v49 = vadd.f32 %v656_v44, %v620_v55 }
 0x1c2   :  { %v734_v52 = vpop.f32.mrf.mxu3  ;;  %v705_v56 = vpop.f32.mrf.mxu2 }
 0x1c3   :  { %v735_v53 = vadd.f32 %v734_v52, %v702_v51  ;;  %v706_v57 = vadd.f32 %v705_v56, %v657_v49 }
 0x1c5   :  { %741 = vst [vmem:[%s1005_s2] sm:$0xff] %v735_v53 }
 0x1ca   :  { %v738_v58 = vpop.f32.mrf.mxu3 }
 0x1cb   :  { %v739_v59 = vadd.f32 %v738_v58, %v706_v57 }
 0x1cd   :  { %742 = vst [vmem:[%s1005_s2 + $0x8] sm:$0xff] %v739_v59 }
 0x1ce   :  { %747 = vsyncpa [#allocation3], 1 }

</bundles_post_ra>
